<compile_context>
chip_gen: v5e
topology: v5e:2x2
jax: 0.10.0
libtpu: 0.0.40
codegen_flags: <defaults>
</compile_context>

<pallas_src>
import functools

import jax
import jax.numpy as jnp
from jax import lax
from jax.experimental import pallas as pl
from jax.experimental.pallas import tpu as pltpu

EPS = 1e-3  # BatchNorm eps=0.001


# ----------------------------- helpers --------------------------------------
def _bn_scale_shift(bn):
    scale = bn["gamma"] / jnp.sqrt(bn["var"] + EPS)
    shift = bn["beta"] - bn["mean"] * scale
    return scale.astype(jnp.float32), shift.astype(jnp.float32)


def _halo_rows(prev_ref, cur_ref, next_ref, t, num_tiles, W, dtype):
    """Return (above, cur, below): the current (C, tile_h*W) tile plus the same
    tile shifted one image row up/down; the 1-row halo comes from the
    neighbouring tiles and is zeroed at the image top/bottom."""
    cur = cur_ref[...].astype(dtype)
    L_tile = cur.shape[1]
    zero_row = jnp.zeros((cur.shape[0], W), dtype)
    prev_last = prev_ref[:, L_tile - W:].astype(dtype)
    next_first = next_ref[:, :W].astype(dtype)
    prev_last = jnp.where(t > 0, prev_last, zero_row)                 # top
    next_first = jnp.where(t < num_tiles - 1, next_first, zero_row)   # bottom
    above = jnp.concatenate([prev_last, cur[:, :L_tile - W]], axis=1)
    below = jnp.concatenate([cur[:, W:], next_first], axis=1)
    return above, cur, below


def _tap(base, dj, W, col):
    """Column-offset dj of a row-aligned (C, tile_h*W) slab (zero outside)."""
    if dj == 0:
        return base
    L_tile = base.shape[1]
    shifted = pltpu.roll(base, shift=(-dj) % L_tile, axis=1)          # XLU
    valid = (col > 0) if dj < 0 else (col < W - 1)
    return jnp.where(valid, shifted, jnp.zeros_like(shifted))


# ----------------------------- kernels ---------------------------------------
def _points_kernel(xp_ref, xc_ref, xn_ref, wfc1_ref, b1_ref, o_ref, *,
                   W, compute_dtype):
    # Runs once (batch 0 only), grid over spatial row tiles.
    t = pl.program_id(0)
    rows = _halo_rows(xp_ref, xc_ref, xn_ref, t, pl.num_programs(0), W,
                      compute_dtype)
    L_tile = rows[1].shape[1]
    col = lax.broadcasted_iota(jnp.int32, (1, L_tile), 1) % W
    wfc1 = wfc1_ref[...]
    m = None
    for base in rows:                         # di = -1, 0, +1
        for dj in (-1, 0, 1):
            tap = _tap(base, dj, W, col)
            y = jnp.dot(wfc1, tap, preferred_element_type=jnp.float32)
            m = y if m is None else jnp.maximum(m, y)
    # BN1 shift + ReLU commute with the 9-way max (scale pre-folded into wfc1,
    # shift must stay AFTER the max).
    o_ref[...] = jnp.maximum(m + b1_ref[...], 0.0).astype(o_ref.dtype)


def _fused_kernel(xp_ref, xc_ref, xn_ref, xpt_ref, wdw_ref, wpwd_ref, wpwp_ref,
                  bdp_ref, b2_ref, o_ref, *, W, n_in, add_residual,
                  compute_dtype):
    t = pl.program_id(1)
    # Depthwise accumulation and residual add stay f32 (exact vs reference).
    rows = _halo_rows(xp_ref, xc_ref, xn_ref, t, pl.num_programs(1), W,
                      jnp.float32)
    cur = rows[1]
    L_tile = cur.shape[1]
    col = lax.broadcasted_iota(jnp.int32, (1, L_tile), 1) % W

    # depthwise 3x3 (VPU MACs) + BN + ReLU; bn_dp scale pre-folded into wdw.
    wdw = wdw_ref[...]
    acc = jnp.zeros_like(cur)
    k = 0
    for base in rows:                         # di = -1, 0, +1
        for dj in (-1, 0, 1):
            acc = acc + _tap(base, dj, W, col) * wdw[:, k:k + 1]
            k += 1
    xdw = jnp.maximum(acc + bdp_ref[...], 0.0)                        # (C, Lt)

    # pointwise 1x1: two accumulating MXU dots (no sublane concat).
    y = jnp.dot(wpwd_ref[...], xdw.astype(compute_dtype),
                preferred_element_type=jnp.float32)
    y = y + jnp.dot(wpwp_ref[...], xpt_ref[...],
                    preferred_element_type=jnp.float32)
    y = jnp.maximum(y + b2_ref[...], 0.0)                             # (O, Lt)
    if add_residual:
        y = y + cur[:n_in, :]
    o_ref[...] = y.astype(o_ref.dtype)


# ----------------------------- wrapper ----------------------------------------
def _pick_tile_h(H, W, C, O, budget_bytes=24 << 20):
    """Largest row tile dividing H with lane-aligned tiles (tile_h*W % 128 == 0)
    whose per-step footprint fits the budget (v7x 64 MiB VMEM friendly)."""
    cands = [th for th in range(1, H + 1)
             if H % th == 0 and ((th * W) % 128 == 0 or th == H)]
    est = lambda th: th * W * 4 * (12 * C + 4 * O)
    fitting = [th for th in cands if est(th) <= budget_bytes]
    return max(fitting) if fitting else min(cands)


def _vmem_limit(C, O, L_tile, cd_bytes):
    f32 = 4
    per_step = (2 * (3 * C * f32 + C * cd_bytes + O * f32) * L_tile   # DMA blocks (2x buffered)
                + (10 * C + 3 * O) * L_tile * f32)                    # live intermediates
    return int(min(96 << 20, max(32 << 20, 2 * per_step)))


def projected_point_conv_down(image, points_arg, inputs, params, first=False,
                              compute_dtype=jnp.float32, tile_h=None):
    """Forward of ProjectedPointConvDown (k=3, s=1, p=1, neighbours=9, mul=1,
    dropprob=0, bias=False, concat_img=True)."""
    # The PyTorch forward overwrites `points` with unfold(inputs[0]); the
    # argument is kept only for signature fidelity.
    del points_arg
    n_in = inputs.shape[1]
    x = jnp.concatenate([inputs, image], axis=1).astype(jnp.float32)
    N, C, H, W = x.shape
    O = params["w_pw"].shape[0]
    if tile_h is None:
        tile_h = _pick_tile_h(H, W, C, O)
    assert H % tile_h == 0
    assert (tile_h * W) % 128 == 0 or tile_h == H, "pick a lane-aligned tile"
    T = H // tile_h
    L, L_tile = H * W, tile_h * W
    x_flat = x.reshape(N, C, L)                 # lane-dense (C, H*W) layout

    s_dp, b_dp = _bn_scale_shift(params["bn_dp"])
    s1, b1 = _bn_scale_shift(params["bn1"])
    s2, b2 = _bn_scale_shift(params["bn"])

    # Fold BN scales into conv weights (exact; shifts applied in-kernel).
    w_dw = (params["w_dw"].reshape(C, 9) * s_dp[:, None]).astype(jnp.float32)
    w_fc1 = (params["w_fc1"] * s1[:, None]).astype(compute_dtype)
    w_pw = params["w_pw"] * s2[:, None]
    w_pw_dw = w_pw[:, :C].astype(compute_dtype)
    w_pw_pt = w_pw[:, C:].astype(compute_dtype)
    b_dp, b1, b2 = b_dp[:, None], b1[:, None], b2[:, None]

    cd_bytes = jnp.dtype(compute_dtype).itemsize
    add_residual = (not first) and (O == n_in)   # spatial dims always match

    halo_spec = lambda imap: pl.BlockSpec((None, C, L_tile), imap)

    # ---- points branch: depends only on batch 0, computed ONCE over tiles ----
    points_fn = functools.partial(_points_kernel, W=W,
                                  compute_dtype=compute_dtype)
    xpt = pl.pallas_call(
        points_fn,
        out_shape=jax.ShapeDtypeStruct((C, L), compute_dtype),
        grid=(T,),
        in_specs=[
            halo_spec(lambda t: (0, 0, jnp.maximum(t - 1, 0))),
            halo_spec(lambda t: (0, 0, t)),
            halo_spec(lambda t: (0, 0, jnp.minimum(t + 1, T - 1))),
            pl.BlockSpec((C, C), lambda t: (0, 0)),
            pl.BlockSpec((C, 1), lambda t: (0, 0)),
        ],
        out_specs=pl.BlockSpec((C, L_tile), lambda t: (0, t)),
        compiler_params=pltpu.CompilerParams(
            dimension_semantics=("parallel",),
            vmem_limit_bytes=_vmem_limit(C, O, L_tile, cd_bytes)),
    )(x_flat, x_flat, x_flat, w_fc1, b1)

    # ---- fused depthwise + pointwise (+BN/ReLU/residual) per (batch, tile) ---
    fused_fn = functools.partial(_fused_kernel, W=W, n_in=n_in,
                                 add_residual=add_residual,
                                 compute_dtype=compute_dtype)
    out = pl.pallas_call(
        fused_fn,
        out_shape=jax.ShapeDtypeStruct((N, O, L), jnp.float32),
        grid=(N, T),
        in_specs=[
            halo_spec(lambda n, t: (n, 0, jnp.maximum(t - 1, 0))),
            halo_spec(lambda n, t: (n, 0, t)),
            halo_spec(lambda n, t: (n, 0, jnp.minimum(t + 1, T - 1))),
            pl.BlockSpec((C, L_tile), lambda n, t: (0, t)),   # precomputed xpt
            pl.BlockSpec((C, 9), lambda n, t: (0, 0)),        # depthwise w
            pl.BlockSpec((O, C), lambda n, t: (0, 0)),        # pw w (xdw half)
            pl.BlockSpec((O, C), lambda n, t: (0, 0)),        # pw w (xpt half)
            pl.BlockSpec((C, 1), lambda n, t: (0, 0)),        # bn_dp shift
            pl.BlockSpec((O, 1), lambda n, t: (0, 0)),        # bn shift
        ],
        out_specs=pl.BlockSpec((None, O, L_tile), lambda n, t: (n, 0, t)),
        compiler_params=pltpu.CompilerParams(
            dimension_semantics=("parallel", "parallel"),
            vmem_limit_bytes=_vmem_limit(C, O, L_tile, cd_bytes)),
    )(x_flat, x_flat, x_flat, xpt, w_dw, w_pw_dw, w_pw_pt, b_dp, b2)
    return out.reshape(N, O, H, W)


# -------------------------- pure-JAX reference --------------------------------
def _bn_apply4d(x, bn):
    scale = bn["gamma"] / jnp.sqrt(bn["var"] + EPS)
    shift = bn["beta"] - bn["mean"] * scale
    return x * scale[None, :, None, None] + shift[None, :, None, None]


def reference_forward(image, inputs, params, first=False):
    residual = inputs
    x_in = jnp.concatenate([inputs, image], axis=1).astype(jnp.float32)
    N, C, H, W = x_in.shape
    L = H * W
    pad0 = jnp.pad(x_in[0], ((0, 0), (1, 1), (1, 1)))
    patches = jnp.stack(
        [pad0[:, ki:ki + H, kj:kj + W].reshape(C, L)
         for ki in range(3) for kj in range(3)], axis=1)
    points = jnp.broadcast_to(patches[None], (N, C, 9, L))

    padx = jnp.pad(x_in, ((0, 0), (0, 0), (1, 1), (1, 1)))
    x = jnp.zeros((N, C, H, W), jnp.float32)
    for ki in range(3):
        for kj in range(3):
            x = x + padx[:, :, ki:ki + H, kj:kj + W] * \
                params["w_dw"][None, :, ki, kj, None, None]
    x = jnp.maximum(_bn_apply4d(x, params["bn_dp"]), 0.0)

    p = jnp.einsum("oc,nckl->nokl", params["w_fc1"], points)
    p = jnp.maximum(_bn_apply4d(p, params["bn1"]), 0.0)
    p = jnp.max(p, axis=2).reshape(N, C, H, W)

    xcat = jnp.concatenate([x, p], axis=1)
    y = jnp.einsum("oc,nchw->nohw", params["w_pw"], xcat)
    y = jnp.maximum(_bn_apply4d(y, params["bn"]), 0.0)

    O = params["w_pw"].shape[0]
    if ((not first) and residual.shape[1] == O
            and residual.shape[2] == H and residual.shape[3] == W):
        y = y + residual
    return y


# ------------------------------ params ----------------------------------------
def _init_bn(key, c):
    k1, k2, k3, k4 = jax.random.split(key, 4)
    return dict(
        gamma=1.0 + 0.1 * jax.random.normal(k1, (c,), jnp.float32),
        beta=0.1 * jax.random.normal(k2, (c,), jnp.float32),
        mean=0.1 * jax.random.normal(k3, (c,), jnp.float32),
        var=jnp.abs(jax.random.normal(k4, (c,), jnp.float32)) + 0.5,
    )


def init_params(key, in_channels, out_planes):
    C, O = in_channels, out_planes
    ks = jax.random.split(key, 6)
    return dict(
        w_dw=0.1 * jax.random.normal(ks[0], (C, 3, 3), jnp.float32),
        w_fc1=0.1 * jax.random.normal(ks[1], (C, C), jnp.float32),
        w_pw=0.1 * jax.random.normal(ks[2], (O, 2 * C), jnp.float32),
        bn_dp=_init_bn(ks[3], C),
        bn1=_init_bn(ks[4], C),
        bn=_init_bn(ks[5], O),
    )


# -------------------------------- main -----------------------------------------
if __name__ == "__main__":
    key = jax.random.PRNGKey(0)
    k_in, k_img, k_par = jax.random.split(key, 3)

    N, Cin, Cimg, H, W = 2, 4, 4, 16, 16
    C = Cin + Cimg          # module in_channels (post concat) = 8
    O = 4                   # out_planes == Cin so the residual branch fires

    inputs = jax.random.normal(k_in, (N, Cin, H, W), jnp.float32)
    image = jax.random.normal(k_img, (N, Cimg, H, W), jnp.float32)
    points_arg = jnp.zeros((N, C, 9, H * W), jnp.float32)  # unused by forward
    params = init_params(k_par, C, O)

    ref = reference_forward(image, inputs, params, first=False)

    # Default (auto tile -> single spatial tile at this size); exact f32 path.
    out = projected_point_conv_down(image, points_arg, inputs, params,
                                    first=False)
    out = jax.block_until_ready(out)
    assert out.shape == (N, O, H, W)
    assert bool(jnp.allclose(out, ref, atol=1e-4, rtol=1e-4)), \
        float(jnp.max(jnp.abs(out - ref)))

    # Row-tiled path (2 spatial tiles; exercises the 1-row halo stitching).
    out_t = projected_point_conv_down(image, points_arg, inputs, params,
                                      first=False, tile_h=8)
    out_t = jax.block_until_ready(out_t)
    assert bool(jnp.allclose(out_t, ref, atol=1e-4, rtol=1e-4)), \
        float(jnp.max(jnp.abs(out_t - ref)))

    # bf16 MXU-operand path (v6e/v7x); activations/residual stay f32 in HBM.
    out_bf16 = projected_point_conv_down(image, points_arg, inputs, params,
                                         first=False, tile_h=8,
                                         compute_dtype=jnp.bfloat16)
    out_bf16 = jax.block_until_ready(out_bf16)
    assert bool(jnp.allclose(out_bf16, ref, atol=1e-1, rtol=1e-1)), \
        float(jnp.max(jnp.abs(out_bf16 - ref)))

    print("KERNEL_OK")
</pallas_src>

<mosaic_0001>
module attributes {stable_mosaic.version = 11 : i64} {
  func.func @_points_kernel(%arg0: i32, %arg1: memref<1x8x256xf32, #tpu.memory_space<vmem>>, %arg2: memref<1x8x256xf32, #tpu.memory_space<vmem>>, %arg3: memref<1x8x256xf32, #tpu.memory_space<vmem>>, %arg4: memref<8x8xf32, #tpu.memory_space<vmem>>, %arg5: memref<8x1xf32, #tpu.memory_space<vmem>>, %arg6: memref<8x256xf32, #tpu.memory_space<vmem>>) attributes {dimension_semantics = [#tpu.dimension_semantics<parallel>], iteration_bounds = array<i64: 1>, scalar_prefetch = 0 : i64, scratch_operands = 0 : i64, tpu.core_type = #tpu.core_type<tc>, window_params = [{transform_indices = @transform_0, window_bounds = array<i64: 1, 8, 256>}, {transform_indices = @transform_1, window_bounds = array<i64: 1, 8, 256>}, {transform_indices = @transform_2, window_bounds = array<i64: 1, 8, 256>}, {pipeline_mode = #tpu.pipeline_mode<synchronous>, transform_indices = @transform_3, window_bounds = array<i64: 8, 8>}, {pipeline_mode = #tpu.pipeline_mode<synchronous>, transform_indices = @transform_4, window_bounds = array<i64: 8, 1>}, {transform_indices = @transform_5, window_bounds = array<i64: 8, 256>}]} {
    %c0 = arith.constant 0 : index
    %c0_0 = arith.constant 0 : index
    %c0_1 = arith.constant 0 : index
    %0 = vector.load %arg2[%c0, %c0_0, %c0_1] : memref<1x8x256xf32, #tpu.memory_space<vmem>>, vector<1x8x256xf32>
    %1 = vector.shape_cast %0 : vector<1x8x256xf32> to vector<8x256xf32>
    %cst = arith.constant 0.000000e+00 : f32
    %2 = vector.broadcast %cst : f32 to vector<8x16xf32>
    %c0_2 = arith.constant 0 : index
    %c0_3 = arith.constant 0 : index
    %c240 = arith.constant 240 : index
    %3 = vector.load %arg1[%c0_2, %c0_3, %c240] : memref<1x8x256xf32, #tpu.memory_space<vmem>>, vector<1x8x16xf32>
    %4 = vector.shape_cast %3 : vector<1x8x16xf32> to vector<8x16xf32>
    %c0_4 = arith.constant 0 : index
    %c0_5 = arith.constant 0 : index
    %c0_6 = arith.constant 0 : index
    %5 = vector.load %arg3[%c0_4, %c0_5, %c0_6] : memref<1x8x256xf32, #tpu.memory_space<vmem>>, vector<1x8x16xf32>
    %6 = vector.shape_cast %5 : vector<1x8x16xf32> to vector<8x16xf32>
    %c0_i32 = arith.constant 0 : i32
    %7 = arith.cmpi sgt, %arg0, %c0_i32 : i32
    %8 = arith.select %7, %4, %2 : vector<8x16xf32>
    %c0_i32_7 = arith.constant 0 : i32
    %9 = arith.cmpi slt, %arg0, %c0_i32_7 : i32
    %10 = arith.select %9, %6, %2 : vector<8x16xf32>
    %11 = vector.extract_strided_slice %1 {offsets = [0, 0], sizes = [8, 240], strides = [1, 1]} : vector<8x256xf32> to vector<8x240xf32>
    %12 = tpu.concatenate %8, %11 in 1 : vector<8x16xf32>, vector<8x240xf32> -> vector<8x256xf32>
    %13 = vector.extract_strided_slice %1 {offsets = [0, 16], sizes = [8, 240], strides = [1, 1]} : vector<8x256xf32> to vector<8x240xf32>
    %14 = tpu.concatenate %13, %10 in 1 : vector<8x240xf32>, vector<8x16xf32> -> vector<8x256xf32>
    %15 = tpu.iota {dimensions = array<i32: 1>} : vector<1x256xi32>
    %c16_i32 = arith.constant 16 : i32
    %c0_i32_8 = arith.constant 0 : i32
    %16 = arith.cmpi eq, %c16_i32, %c0_i32_8 : i32
    %c1_i32 = arith.constant 1 : i32
    %17 = arith.select %16, %c1_i32, %c16_i32 : i32
    %18 = vector.broadcast %17 : i32 to vector<1x256xi32>
    %19 = arith.remsi %15, %18 : vector<1x256xi32>
    %c0_i32_9 = arith.constant 0 : i32
    %20 = vector.broadcast %c0_i32_9 : i32 to vector<1x256xi32>
    %21 = arith.cmpi ne, %19, %20 : vector<1x256xi32>
    %c0_i32_10 = arith.constant 0 : i32
    %22 = vector.broadcast %c0_i32_10 : i32 to vector<1x256xi32>
    %23 = arith.cmpi slt, %19, %22 : vector<1x256xi32>
    %c0_i32_11 = arith.constant 0 : i32
    %24 = arith.cmpi slt, %17, %c0_i32_11 : i32
    %25 = vector.broadcast %24 : i1 to vector<1x256xi1>
    %26 = vector.broadcast %25 : vector<1x256xi1> to vector<1x256xi1>
    %27 = arith.xori %23, %26 : vector<1x256xi1>
    %28 = arith.andi %27, %21 : vector<1x256xi1>
    %29 = vector.broadcast %17 : i32 to vector<1x256xi32>
    %30 = arith.addi %19, %29 : vector<1x256xi32>
    %31 = arith.select %28, %30, %19 : vector<1x256xi1>, vector<1x256xi32>
    %c0_12 = arith.constant 0 : index
    %c0_13 = arith.constant 0 : index
    %32 = vector.load %arg4[%c0_12, %c0_13] : memref<8x8xf32, #tpu.memory_space<vmem>>, vector<8x8xf32>
    %c1_i32_14 = arith.constant 1 : i32
    %33 = tpu.dynamic_rotate %12 by %c1_i32_14 dim 1 : vector<8x256xf32>, i32 -> vector<8x256xf32>
    %c0_i32_15 = arith.constant 0 : i32
    %34 = vector.broadcast %c0_i32_15 : i32 to vector<1x256xi32>
    %35 = arith.cmpi sgt, %31, %34 : vector<1x256xi32>
    %cst_16 = arith.constant 0.000000e+00 : f32
    %36 = vector.broadcast %cst_16 : f32 to vector<8x256xf32>
    %37 = vector.shape_cast %35 : vector<1x256xi1> to vector<1x256xi1>
    %38 = vector.broadcast %37 : vector<1x256xi1> to vector<8x256xi1>
    %39 = arith.select %38, %33, %36 : vector<8x256xi1>, vector<8x256xf32>
    %cst_17 = arith.constant dense<0.000000e+00> : vector<8x256xf32>
    %40 = tpu.matmul %32, %39, %cst_17 {dimension_numbers = #tpu.dot_dimension_numbers<[1], [0], [0], [1], [0, 0, 1, 1], [], []>} : vector<8x8xf32>, vector<8x256xf32>, vector<8x256xf32> -> vector<8x256xf32>
    %cst_18 = arith.constant dense<0.000000e+00> : vector<8x256xf32>
    %41 = tpu.matmul %32, %12, %cst_18 {dimension_numbers = #tpu.dot_dimension_numbers<[1], [0], [0], [1], [0, 0, 1, 1], [], []>} : vector<8x8xf32>, vector<8x256xf32>, vector<8x256xf32> -> vector<8x256xf32>
    %42 = arith.maximumf %40, %41 : vector<8x256xf32>
    %c255_i32 = arith.constant 255 : i32
    %43 = tpu.dynamic_rotate %12 by %c255_i32 dim 1 : vector<8x256xf32>, i32 -> vector<8x256xf32>
    %c15_i32 = arith.constant 15 : i32
    %44 = vector.broadcast %c15_i32 : i32 to vector<1x256xi32>
    %45 = arith.cmpi slt, %31, %44 : vector<1x256xi32>
    %cst_19 = arith.constant 0.000000e+00 : f32
    %46 = vector.broadcast %cst_19 : f32 to vector<8x256xf32>
    %47 = vector.shape_cast %45 : vector<1x256xi1> to vector<1x256xi1>
    %48 = vector.broadcast %47 : vector<1x256xi1> to vector<8x256xi1>
    %49 = arith.select %48, %43, %46 : vector<8x256xi1>, vector<8x256xf32>
    %cst_20 = arith.constant dense<0.000000e+00> : vector<8x256xf32>
    %50 = tpu.matmul %32, %49, %cst_20 {dimension_numbers = #tpu.dot_dimension_numbers<[1], [0], [0], [1], [0, 0, 1, 1], [], []>} : vector<8x8xf32>, vector<8x256xf32>, vector<8x256xf32> -> vector<8x256xf32>
    %51 = arith.maximumf %42, %50 : vector<8x256xf32>
    %c1_i32_21 = arith.constant 1 : i32
    %52 = tpu.dynamic_rotate %1 by %c1_i32_21 dim 1 : vector<8x256xf32>, i32 -> vector<8x256xf32>
    %c0_i32_22 = arith.constant 0 : i32
    %53 = vector.broadcast %c0_i32_22 : i32 to vector<1x256xi32>
    %54 = arith.cmpi sgt, %31, %53 : vector<1x256xi32>
    %cst_23 = arith.constant 0.000000e+00 : f32
    %55 = vector.broadcast %cst_23 : f32 to vector<8x256xf32>
    %56 = vector.shape_cast %54 : vector<1x256xi1> to vector<1x256xi1>
    %57 = vector.broadcast %56 : vector<1x256xi1> to vector<8x256xi1>
    %58 = arith.select %57, %52, %55 : vector<8x256xi1>, vector<8x256xf32>
    %cst_24 = arith.constant dense<0.000000e+00> : vector<8x256xf32>
    %59 = tpu.matmul %32, %58, %cst_24 {dimension_numbers = #tpu.dot_dimension_numbers<[1], [0], [0], [1], [0, 0, 1, 1], [], []>} : vector<8x8xf32>, vector<8x256xf32>, vector<8x256xf32> -> vector<8x256xf32>
    %60 = arith.maximumf %51, %59 : vector<8x256xf32>
    %cst_25 = arith.constant dense<0.000000e+00> : vector<8x256xf32>
    %61 = tpu.matmul %32, %1, %cst_25 {dimension_numbers = #tpu.dot_dimension_numbers<[1], [0], [0], [1], [0, 0, 1, 1], [], []>} : vector<8x8xf32>, vector<8x256xf32>, vector<8x256xf32> -> vector<8x256xf32>
    %62 = arith.maximumf %60, %61 : vector<8x256xf32>
    %c255_i32_26 = arith.constant 255 : i32
    %63 = tpu.dynamic_rotate %1 by %c255_i32_26 dim 1 : vector<8x256xf32>, i32 -> vector<8x256xf32>
    %c15_i32_27 = arith.constant 15 : i32
    %64 = vector.broadcast %c15_i32_27 : i32 to vector<1x256xi32>
    %65 = arith.cmpi slt, %31, %64 : vector<1x256xi32>
    %cst_28 = arith.constant 0.000000e+00 : f32
    %66 = vector.broadcast %cst_28 : f32 to vector<8x256xf32>
    %67 = vector.shape_cast %65 : vector<1x256xi1> to vector<1x256xi1>
    %68 = vector.broadcast %67 : vector<1x256xi1> to vector<8x256xi1>
    %69 = arith.select %68, %63, %66 : vector<8x256xi1>, vector<8x256xf32>
    %cst_29 = arith.constant dense<0.000000e+00> : vector<8x256xf32>
    %70 = tpu.matmul %32, %69, %cst_29 {dimension_numbers = #tpu.dot_dimension_numbers<[1], [0], [0], [1], [0, 0, 1, 1], [], []>} : vector<8x8xf32>, vector<8x256xf32>, vector<8x256xf32> -> vector<8x256xf32>
    %71 = arith.maximumf %62, %70 : vector<8x256xf32>
    %c1_i32_30 = arith.constant 1 : i32
    %72 = tpu.dynamic_rotate %14 by %c1_i32_30 dim 1 : vector<8x256xf32>, i32 -> vector<8x256xf32>
    %c0_i32_31 = arith.constant 0 : i32
    %73 = vector.broadcast %c0_i32_31 : i32 to vector<1x256xi32>
    %74 = arith.cmpi sgt, %31, %73 : vector<1x256xi32>
    %cst_32 = arith.constant 0.000000e+00 : f32
    %75 = vector.broadcast %cst_32 : f32 to vector<8x256xf32>
    %76 = vector.shape_cast %74 : vector<1x256xi1> to vector<1x256xi1>
    %77 = vector.broadcast %76 : vector<1x256xi1> to vector<8x256xi1>
    %78 = arith.select %77, %72, %75 : vector<8x256xi1>, vector<8x256xf32>
    %cst_33 = arith.constant dense<0.000000e+00> : vector<8x256xf32>
    %79 = tpu.matmul %32, %78, %cst_33 {dimension_numbers = #tpu.dot_dimension_numbers<[1], [0], [0], [1], [0, 0, 1, 1], [], []>} : vector<8x8xf32>, vector<8x256xf32>, vector<8x256xf32> -> vector<8x256xf32>
    %80 = arith.maximumf %71, %79 : vector<8x256xf32>
    %cst_34 = arith.constant dense<0.000000e+00> : vector<8x256xf32>
    %81 = tpu.matmul %32, %14, %cst_34 {dimension_numbers = #tpu.dot_dimension_numbers<[1], [0], [0], [1], [0, 0, 1, 1], [], []>} : vector<8x8xf32>, vector<8x256xf32>, vector<8x256xf32> -> vector<8x256xf32>
    %82 = arith.maximumf %80, %81 : vector<8x256xf32>
    %c255_i32_35 = arith.constant 255 : i32
    %83 = tpu.dynamic_rotate %14 by %c255_i32_35 dim 1 : vector<8x256xf32>, i32 -> vector<8x256xf32>
    %c15_i32_36 = arith.constant 15 : i32
    %84 = vector.broadcast %c15_i32_36 : i32 to vector<1x256xi32>
    %85 = arith.cmpi slt, %31, %84 : vector<1x256xi32>
    %cst_37 = arith.constant 0.000000e+00 : f32
    %86 = vector.broadcast %cst_37 : f32 to vector<8x256xf32>
    %87 = vector.shape_cast %85 : vector<1x256xi1> to vector<1x256xi1>
    %88 = vector.broadcast %87 : vector<1x256xi1> to vector<8x256xi1>
    %89 = arith.select %88, %83, %86 : vector<8x256xi1>, vector<8x256xf32>
    %cst_38 = arith.constant dense<0.000000e+00> : vector<8x256xf32>
    %90 = tpu.matmul %32, %89, %cst_38 {dimension_numbers = #tpu.dot_dimension_numbers<[1], [0], [0], [1], [0, 0, 1, 1], [], []>} : vector<8x8xf32>, vector<8x256xf32>, vector<8x256xf32> -> vector<8x256xf32>
    %91 = arith.maximumf %82, %90 : vector<8x256xf32>
    %c0_39 = arith.constant 0 : index
    %c0_40 = arith.constant 0 : index
    %92 = vector.load %arg5[%c0_39, %c0_40] : memref<8x1xf32, #tpu.memory_space<vmem>>, vector<8x1xf32>
    %93 = vector.broadcast %92 : vector<8x1xf32> to vector<8x256xf32>
    %94 = arith.addf %91, %93 : vector<8x256xf32>
    %cst_41 = arith.constant 0.000000e+00 : f32
    %95 = vector.broadcast %cst_41 : f32 to vector<8x256xf32>
    %96 = arith.maximumf %94, %95 : vector<8x256xf32>
    %c0_42 = arith.constant 0 : index
    %c0_43 = arith.constant 0 : index
    %97 = vector.load %arg6[%c0_42, %c0_43] : memref<8x256xf32, #tpu.memory_space<vmem>>, vector<8x256xf32>
    tpu.vector_store %arg6[%c0_42, %c0_43], %96 {strides = array<i32>} : memref<8x256xf32, #tpu.memory_space<vmem>>, vector<8x256xf32>,
    return
  }
  func.func @transform_0(%arg0: i32) -> (i32, i32, i32) {
    %c1_i32 = arith.constant 1 : i32
    %0 = arith.subi %arg0, %c1_i32 : i32
    %c0_i32 = arith.constant 0 : i32
    %1 = arith.maxsi %0, %c0_i32 : i32
    %c0_i32_0 = arith.constant 0 : i32
    %c0_i32_1 = arith.constant 0 : i32
    %c0_i32_2 = arith.constant 0 : i32
    return %c0_i32_0, %c0_i32_1, %1 : i32, i32, i32
  }
  func.func @transform_1(%arg0: i32) -> (i32, i32, i32) {
    %c0_i32 = arith.constant 0 : i32
    %c0_i32_0 = arith.constant 0 : i32
    %c0_i32_1 = arith.constant 0 : i32
    return %c0_i32, %c0_i32_0, %arg0 : i32, i32, i32
  }
  func.func @transform_2(%arg0: i32) -> (i32, i32, i32) {
    %c1_i32 = arith.constant 1 : i32
    %0 = arith.addi %arg0, %c1_i32 : i32
    %c0_i32 = arith.constant 0 : i32
    %1 = arith.minsi %0, %c0_i32 : i32
    %c0_i32_0 = arith.constant 0 : i32
    %c0_i32_1 = arith.constant 0 : i32
    %c0_i32_2 = arith.constant 0 : i32
    return %c0_i32_0, %c0_i32_1, %1 : i32, i32, i32
  }
  func.func @transform_3(%arg0: i32) -> (i32, i32) {
    %c0_i32 = arith.constant 0 : i32
    %c0_i32_0 = arith.constant 0 : i32
    %c0_i32_1 = arith.constant 0 : i32
    return %c0_i32, %c0_i32_0 : i32, i32
  }
  func.func @transform_4(%arg0: i32) -> (i32, i32) {
    %c0_i32 = arith.constant 0 : i32
    %c0_i32_0 = arith.constant 0 : i32
    %c0_i32_1 = arith.constant 0 : i32
    return %c0_i32, %c0_i32_0 : i32, i32
  }
  func.func @transform_5(%arg0: i32) -> (i32, i32) {
    %c0_i32 = arith.constant 0 : i32
    %c0_i32_0 = arith.constant 0 : i32
    return %c0_i32, %arg0 : i32, i32
  }
}

</mosaic_0001>

<bundles_post_ra>
// kernel: tpu_custom_call.1
= control target key start
LH: loop header
LB: loop body
LE: loop exit
PB: predicated region body
PF: predicated region fallthrough
CT: control target
= control target key end

     0   :  { %10 = vsyncpa [#allocation3], 0  ;;  %s938_s0 = inlined_call_operand.hbm [shape: f32[2,8,256], index: 0, kind: input, shape index: {}]   ;;  %s939_s1 = inlined_call_operand.hbm [shape: f32[2,8,256], index: 1, kind: input, shape index: {}]   ;;  %s940_s2 = inlined_call_operand.hbm [shape: f32[2,8,256], index: 2, kind: input, shape index: {}]   ;;  %s941_s3 = inlined_call_operand.vmem [shape: f32[8,8], index: 3, kind: input, shape index: {}]   ;;  %s942_s4 = inlined_call_operand.vmem [shape: f32[8,1], index: 4, kind: input, shape index: {}]   ;;  %s943_s5 = inlined_call_operand.hbm [shape: f32[8,256], index: 5, kind: output, shape index: {}]  }
   0x1   :  { %11 = vsyncpa [#allocation6], 0  ;;  %s35_s20 = sshll.u32 %s939_s1, 4  ;;  %s36_s20 = int_to_ptr.hbm [resolvable:$true] %s35_s20 }
   0x2   :  { %12 = vsyncpa [#allocation4], 0  ;;  %s771_s21 = smov [#allocation5]   ;;  %s24_s25 = sshll.u32 %s938_s0, 4  ;;  %s25_s25 = int_to_ptr.hbm [resolvable:$true] %s24_s25 }
   0x3   :  { %s37_s22 = sshll.u32 %s771_s21, 4  ;;  %s772_s26 = smov [#allocation2]   ;;  %s38_s22 = int_to_ptr.vmem [resolvable:$true] %s37_s22 }
   0x4   :  { %40 = dma.hbm_to_vmem [thread:$0]  %s36_s20, 256, %s38_s22, [#allocation6]  }
   0x5   :  { %s26_s27 = sshll.u32 %s772_s26, 4  ;;  %s52_s30 = sshll.u32 %s940_s2, 4  ;;  %s27_s27 = int_to_ptr.vmem [resolvable:$true] %s26_s27  ;;  %s53_s30 = int_to_ptr.hbm [resolvable:$true] %s52_s30 }
   0x6   :  { %29 = dma.hbm_to_vmem [thread:$0]  %s25_s25, 256, %s27_s27, [#allocation3]  }
   0x7   :  { %s773_s1 = smov [#allocation7]  }
   0x8   :  { %s54_s6 = sshll.u32 %s773_s1, 4  ;;  %s55_s6 = int_to_ptr.vmem [resolvable:$true] %s54_s6 }
   0x9   :  { %57 = dma.hbm_to_vmem [thread:$0]  %s53_s30, 256, %s55_s6, [#allocation6]  }
   0xa   :  { %765 = dma.done.wait [#allocation3], 256  }
   0xb   :  { %766 = vsyncadd [#allocation3], 4294967040 }
   0xc   :  { %767 = dma.done.wait [#allocation6], 512  }
   0xd   :  { %768 = vsyncadd [#allocation6], 4294966784  ;;  %v774_v0 = vmov 0.0   ;;  %s775_s0 = smov 16   ;;  %v820_v1 = vld [vmem:[#allocation5 + $0x8] sm:$0xff]  ;;  %v822_v2 = vld [vmem:[#allocation5] sm:$0xff]  ;;  %v124_v14 = vlaneseq }
   0xe   :  { %97 = vrot.lane.b32.xlu0 %v774_v0, %s775_s0  ;;  %104 = vrot.lane.b32.xlu1 %v820_v1, %s775_s0  ;;  %s776_s2 = smov 112   ;;  %vm106_vm0 = vcmask 130048   ;;  %s777_s7 = smov 127   ;;  %vm115_vm1 = vcmask 916480   ;;  %v839_v13 = vld [vmem:[%s941_s3] sm:$0xff]  ;;  %vm167_vm2 = vcmask 64512  }
   0xf   :  { %113 = vrot.lane.b32.xlu2 %v820_v1, %s776_s2  ;;  %s778_s8 = smov 1   ;;  %v125_v15 = vand.u32 127, %v124_v14  ;;  %v594_v26 = vld [vmem:[%s942_s4] sm:$0xff]  ;;  %v779_v28 = vmov 0   ;;  %s780_s4 = smov [#allocation8]  }
  0x10   :  { %668 = vset.pattern.permute.xlu0 %v779_v28  ;;  %s611_s12 = sshll.u32 %s780_s4, 4  ;;  %s613_s15 = sshll.u32 %s943_s5, 4  ;;  %s612_s12 = int_to_ptr.vmem [resolvable:$true] %s611_s12  ;;  %s614_s15 = int_to_ptr.hbm [resolvable:$true] %s613_s15 }
  0x11   :  { %v126_v16 = vadd.s32 128, %v125_v15  ;;  %v131_v18 = vand.u32 15, %v125_v15  ;;  %vm156_vm3 = vcmp.lt.s32.totalorder %v125_v15, 1  ;;  %vm257_vm6 = vcmp.lt.s32.totalorder %v125_v15, 127 }
  0x13   :  { %v138_v19 = vand.u32 15, %v126_v16  ;;  %vm845_vm4 = vcmp.gt.s32.totalorder %v131_v18, 0  ;;  %vm866_vm7 = vcmp.lt.s32.totalorder %v131_v18, 15 }
  0x15   :  { %vm849_vm5 = vcmp.gt.s32.totalorder %v138_v19, 0  ;;  %vm870_vm8 = vcmp.lt.s32.totalorder %v138_v19, 15 }
  0x16   :  { %102 = vrot.lane.b32.xlu0 %v822_v2, %s775_s0  ;;  %111 = vrot.lane.b32.xlu1 %v822_v2, %s776_s2 }
  0x17   :  { %120 = vrot.lane.b32.xlu2 %v774_v0, %s776_s2 }
  0x69   :  { %v114_v8 = vpop.permute.xlu2 %113 }
  0x71   :  { %v121_v11 = vpop.permute.xlu2 %120 }
  0x72   :  { %v123_v12 = vsel %vm115_vm1, %v114_v8, %v121_v11 }
  0x80   :  { %v98_v3 = vpop.permute.xlu0 %97  ;;  %v105_v4 = vpop.permute.xlu1 %104 }
  0x88   :  { %v103_v5 = vpop.permute.xlu0 %102  ;;  %v112_v9 = vpop.permute.xlu1 %111 }
  0x89   :  { %v110_v6 = vsel %vm106_vm0, %v98_v3, %v103_v5  ;;  %v107_v7 = vsel %vm106_vm0, %v103_v5, %v105_v4  ;;  %v830_v10 = vsel %vm115_vm1, %v112_v9, %v114_v8 }
  0x8a   :  { %253 = vrot.lane.b32.xlu2 %v110_v6, %s777_s7  ;;  %152 = vrot.lane.b32.xlu0 %v110_v6, %s778_s8 }
  0x8b   :  { %226 = vmatpush.msra.mxu2 %v110_v6  ;;  %154 = vrot.lane.b32.xlu1 %v107_v7, %s778_s8 }
  0x8c   :  { %246 = vmatpush.msra.mxu3 %v107_v7  ;;  %632 = vmatmul.msk.f32.vlgmr.msra.gmra.mxu2 %vm167_vm2, %v839_v13 }
  0x8d   :  { %633 = vmatmul.msk.f32.vlgmr.msra.gmra.mxu3 %vm167_vm2, %v839_v13 }
  0x92   :  { %312 = vrot.lane.b32.xlu2 %v820_v1, %s778_s8  ;;  %255 = vrot.lane.b32.xlu0 %v107_v7, %s777_s7 }
  0x93   :  { %310 = vrot.lane.b32.xlu1 %v822_v2, %s778_s8 }
  0x9a   :  { %452 = vrot.lane.b32.xlu2 %v830_v10, %s778_s8  ;;  %402 = vrot.lane.b32.xlu0 %v822_v2, %s777_s7 }
  0x9b   :  { %404 = vrot.lane.b32.xlu1 %v820_v1, %s777_s7 }
  0xa2   :  { %546 = vrot.lane.b32.xlu2 %v123_v12, %s777_s7  ;;  %454 = vrot.lane.b32.xlu0 %v123_v12, %s778_s8 }
  0xa3   :  { %544 = vrot.lane.b32.xlu1 %v830_v10, %s777_s7 }
  0xaa   :  { %597 = vperm.xlu0 %668, %v594_v26  }
  0xe4   :  { %v254_v17 = vpop.permute.xlu2 %253 }
  0xec   :  { %v313_v27 = vpop.permute.xlu2 %312 }
  0xf4   :  { %v453_v37 = vpop.permute.xlu2 %452 }
  0xfc   :  { %v153_v20 = vpop.permute.xlu0 %152  ;;  %v547_v43 = vpop.permute.xlu2 %546 }
  0xfd   :  { %v155_v23 = vpop.permute.xlu1 %154 }
  0xfe   :  { %v158_v24 = vsel %vm156_vm3, %v155_v23, %v153_v20  ;;  %v157_v25 = vsel %vm156_vm3, %v153_v20, %v155_v23 }
  0xff   :  { %628 = vmatpush.msk.msra.mxu0 %vm845_vm4, %v158_v24  ;;  %630 = vmatpush.msk.msra.mxu1 %vm849_vm5, %v157_v25 }
 0x100   :  { %629 = vmatmul.msk.f32.vlgmr.msra.gmra.mxu0 %vm167_vm2, %v839_v13  ;;  %631 = vmatmul.msk.f32.vlgmr.msra.gmra.mxu1 %vm167_vm2, %v839_v13 }
 0x104   :  { %v256_v31 = vpop.permute.xlu0 %255 }
 0x105   :  { %v311_v32 = vpop.permute.xlu1 %310  ;;  %v258_v33 = vsel %vm257_vm6, %v254_v17, %v256_v31  ;;  %v259_v34 = vsel %vm257_vm6, %v256_v31, %v254_v17 }
 0x106   :  { %634 = vmatpush.msk.msrb.mxu0 %vm866_vm7, %v258_v33  ;;  %636 = vmatpush.msk.msrb.mxu1 %vm870_vm8, %v259_v34  ;;  %v315_v35 = vsel %vm156_vm3, %v313_v27, %v311_v32  ;;  %v314_v36 = vsel %vm156_vm3, %v311_v32, %v313_v27 }
 0x107   :  { %638 = vmatpush.msk.msrb.mxu2 %vm845_vm4, %v315_v35  ;;  %640 = vmatpush.msk.msrb.mxu3 %vm849_vm5, %v314_v36 }
 0x108   :  { %635 = vmatmul.msk.f32.vlgmr.msrb.gmra.mxu0 %vm167_vm2, %v839_v13  ;;  %637 = vmatmul.msk.f32.vlgmr.msrb.gmra.mxu1 %vm167_vm2, %v839_v13 }
 0x109   :  { %639 = vmatmul.msk.f32.vlgmr.msrb.gmra.mxu2 %vm167_vm2, %v839_v13  ;;  %641 = vmatmul.msk.f32.vlgmr.msrb.gmra.mxu3 %vm167_vm2, %v839_v13 }
 0x10a   :  { %375 = vmatpush.msra.mxu0 %v822_v2  ;;  %395 = vmatpush.msra.mxu1 %v820_v1 }
 0x10c   :  { %v403_v38 = vpop.permute.xlu0 %402 }
 0x10d   :  { %v405_v39 = vpop.permute.xlu1 %404 }
 0x10e   :  { %v406_v40 = vsel %vm257_vm6, %v403_v38, %v405_v39  ;;  %v407_v41 = vsel %vm257_vm6, %v405_v39, %v403_v38 }
 0x10f   :  { %644 = vmatpush.msk.msra.mxu2 %vm866_vm7, %v406_v40  ;;  %646 = vmatpush.msk.msra.mxu3 %vm870_vm8, %v407_v41  ;;  %v228_v51 = vpop.f32.mrf.mxu2 }
 0x110   :  { %642 = vmatmul.msk.f32.vlgmr.msra.gmra.mxu0 %vm167_vm2, %v839_v13  ;;  %643 = vmatmul.msk.f32.vlgmr.msra.gmra.mxu1 %vm167_vm2, %v839_v13  ;;  %v248_v52 = vpop.f32.mrf.mxu3 }
 0x111   :  { %645 = vmatmul.msk.f32.vlgmr.msra.gmra.mxu2 %vm167_vm2, %v839_v13  ;;  %647 = vmatmul.msk.f32.vlgmr.msra.gmra.mxu3 %vm167_vm2, %v839_v13 }
 0x112   :  { %517 = vmatpush.msrb.mxu2 %v830_v10  ;;  %537 = vmatpush.msrb.mxu3 %v123_v12 }
 0x114   :  { %v455_v42 = vpop.permute.xlu0 %454 }
 0x115   :  { %v456_v44 = vsel %vm156_vm3, %v453_v37, %v455_v42  ;;  %v457_v45 = vsel %vm156_vm3, %v455_v42, %v453_v37  ;;  %v545_v46 = vpop.permute.xlu1 %544 }
 0x116   :  { %v548_v47 = vsel %vm257_vm6, %v545_v46, %v547_v43  ;;  %v549_v48 = vsel %vm257_vm6, %v547_v43, %v545_v46  ;;  %648 = vmatpush.msk.msrb.mxu0 %vm845_vm4, %v457_v45  ;;  %650 = vmatpush.msk.msrb.mxu1 %vm849_vm5, %v456_v44 }
 0x118   :  { %654 = vmatpush.msk.msra.mxu0 %vm866_vm7, %v548_v47  ;;  %656 = vmatpush.msk.msra.mxu1 %vm870_vm8, %v549_v48 }
 0x119   :  { %649 = vmatmul.msk.f32.vlgmr.msrb.gmra.mxu0 %vm167_vm2, %v839_v13  ;;  %651 = vmatmul.msk.f32.vlgmr.msrb.gmra.mxu1 %vm167_vm2, %v839_v13 }
 0x11a   :  { %652 = vmatmul.msk.f32.vlgmr.msrb.gmra.mxu2 %vm167_vm2, %v839_v13  ;;  %653 = vmatmul.msk.f32.vlgmr.msrb.gmra.mxu3 %vm167_vm2, %v839_v13 }
 0x11c   :  { %v598_v17 = vpop.permute.xlu0 %597 }
 0x121   :  { %655 = vmatmul.msk.f32.vlgmr.msra.gmra.mxu0 %vm167_vm2, %v839_v13  ;;  %657 = vmatmul.msk.f32.vlgmr.msra.gmra.mxu1 %vm167_vm2, %v839_v13 }
 0x17d   :  { %v188_v49 = vpop.f32.mrf.mxu0  ;;  %v208_v50 = vpop.f32.mrf.mxu1 }
 0x17e   :  { %v251_v57 = vmax.f32 %v188_v49, %v228_v51  ;;  %v252_v58 = vmax.f32 %v208_v50, %v248_v52 }
 0x185   :  { %v285_v53 = vpop.f32.mrf.mxu0  ;;  %v305_v54 = vpop.f32.mrf.mxu1 }
 0x186   :  { %v308_v61 = vmax.f32 %v251_v57, %v285_v53  ;;  %v309_v62 = vmax.f32 %v252_v58, %v305_v54 }
 0x18c   :  { %v335_v55 = vpop.f32.mrf.mxu2  ;;  %v355_v56 = vpop.f32.mrf.mxu3 }
 0x18d   :  { %v377_v59 = vpop.f32.mrf.mxu0  ;;  %v397_v60 = vpop.f32.mrf.mxu1  ;;  %v358_v63 = vmax.f32 %v308_v61, %v335_v55  ;;  %v359_v0 = vmax.f32 %v309_v62, %v355_v56 }
 0x18f   :  { %v400_v3 = vmax.f32 %v358_v63, %v377_v59  ;;  %v401_v4 = vmax.f32 %v359_v0, %v397_v60 }
 0x194   :  { %v427_v1 = vpop.f32.mrf.mxu2  ;;  %v447_v2 = vpop.f32.mrf.mxu3 }
 0x195   :  { %v450_v7 = vmax.f32 %v400_v3, %v427_v1  ;;  %v451_v8 = vmax.f32 %v401_v4, %v447_v2 }
 0x196   :  { %v477_v5 = vpop.f32.mrf.mxu0  ;;  %v497_v6 = vpop.f32.mrf.mxu1 }
 0x197   :  { %v500_v9 = vmax.f32 %v450_v7, %v477_v5  ;;  %v501_v10 = vmax.f32 %v451_v8, %v497_v6 }
 0x19d   :  { %v519_v11 = vpop.f32.mrf.mxu2  ;;  %v539_v12 = vpop.f32.mrf.mxu3 }
 0x19e   :  { %v542_v13 = vmax.f32 %v500_v9, %v519_v11  ;;  %v543_v14 = vmax.f32 %v501_v10, %v539_v12  ;;  %v569_v15 = vpop.f32.mrf.mxu0  ;;  %v589_v16 = vpop.f32.mrf.mxu1 }
 0x1a0   :  { %v592_v18 = vmax.f32 %v542_v13, %v569_v15  ;;  %v593_v19 = vmax.f32 %v543_v14, %v589_v16 }
 0x1a2   :  { %v600_v20 = vadd.f32 %v598_v17, %v592_v18  ;;  %v601_v21 = vadd.f32 %v598_v17, %v593_v19 }
 0x1a4   :  { %v602_v22 = vmax.f32 %v600_v20, 0.0  ;;  %v603_v23 = vmax.f32 %v601_v21, 0.0 }
 0x1a6   :  { %604 = vst [vmem:[#allocation8] sm:$0xff] %v602_v22 }
 0x1a7   :  { %605 = vst [vmem:[#allocation8 + $0x8] sm:$0xff] %v603_v23 }
 0x1a8   :  { %616 = dma.vmem_to_hbm [thread:$0]  %s612_s12, 256, %s614_s15, [#allocation4]  }
 0x1a9   :  { %769 = dma.done.wait [#allocation4], 256  }
 0x1aa   :  { %770 = vsyncadd [#allocation4], 4294967040 }
 0x1ab   :  { %621 = vsyncpa [#allocation3], 1 }
 0x1ac   :  { %622 = vsyncpa [#allocation6], 1 }
 0x1ad   :  { %623 = vsyncpa [#allocation4], 1 }

</bundles_post_ra>
